<compile_context>
chip_gen: v7x
topology: tpu7x:2x2x1
jax: 0.10.0
libtpu: 0.0.40
codegen_flags: <defaults>
</compile_context>

<pallas_src>
import functools

import jax
import jax.numpy as jnp
from jax.experimental import pallas as pl
from jax.experimental.pallas import tpu as pltpu


def _round_up(x, m):
    return (x + m - 1) // m * m


def _conv_relu(x, w_mat, b_col, *, k, w_img, l_out):
    """One valid KxK conv + bias + ReLU as a single im2col matmul.

    x:     (C, L_in) f32, row-major flattened (H, W) frame, zero-padded so that
           L_in >= l_out + (k-1)*w_img + (k-1).
    w_mat: (Cout, K*K*C) f32, columns ordered as (kh, kw, c).
    b_col: (Cout, 1) f32.
    Returns (Cout, l_out) f32; lane i = oh*w_img + ow holds the conv output at (oh, ow) for
    every valid (oh, ow); other lanes are don't-care (finite garbage, sliced off later).
    """
    taps = []
    for kh in range(k):
        for kw in range(k):
            off = kh * w_img + kw
            taps.append(x[:, off:off + l_out])          # static lane-axis slice (XLU shift)
    patches = jnp.concatenate(taps, axis=0)             # (K*K*C, l_out), sublane-aligned
    acc = jax.lax.dot_general(                          # single MXU matmul per conv
        w_mat, patches,
        dimension_numbers=(((1,), (0,)), ((), ())),
        preferred_element_type=jnp.float32)             # (Cout, l_out)
    return jnp.maximum(acc + b_col, 0.0)                # bias once + ReLU (VPU)


def _unet_block_kernel(x_ref, w1_ref, b1_ref, w2_ref, b2_ref, o_ref, *, k, w_img, l1, l2):
    # x_ref: (1, Cin_p, L0) — one image per grid step, flattened zero-padded NCHW.
    x = x_ref[0].astype(jnp.float32)
    w1 = w1_ref[...].astype(jnp.float32)
    w2 = w2_ref[...].astype(jnp.float32)
    h = _conv_relu(x, w1, b1_ref[...], k=k, w_img=w_img, l_out=l1)   # (Cmid_p, L1) in-VMEM
    o = _conv_relu(h, w2, b2_ref[...], k=k, w_img=w_img, l_out=l2)   # (Cout_p, L2)
    o_ref[0] = o.astype(o_ref.dtype)


def unet_conv_block(x_nchw, w1, b1, w2, b2, kernel_size=3):
    """x_nchw: (N, Cin, H, W). w1: (Cmid, Cin, K, K), w2: (Cout, Cmid, K, K) (PyTorch OIHW)."""
    N, Cin, H, W = x_nchw.shape
    Cmid = w1.shape[0]
    Cout = w2.shape[0]
    k = kernel_size
    Ho1, Wo1 = H - k + 1, W - k + 1
    Ho2, Wo2 = Ho1 - k + 1, Wo1 - k + 1
    HW = H * W
    max_off = (k - 1) * W + (k - 1)

    # Lane-dense frame widths (multiples of 128). The stored frame covers the full original
    # H*W grid so the wrapper extracts the valid (Ho2, Wo2) window with a cheap slice.
    L2 = _round_up(HW, 128)               # conv2 output frame (what the kernel stores)
    L1 = _round_up(L2 + max_off, 128)     # conv1 output frame (lives only inside the kernel)
    L0 = _round_up(L1 + max_off, 128)     # zero-padded input frame

    # Sublane-align channel counts so im2col concatenation stays (8,128)-tile aligned.
    Cin_p = _round_up(Cin, 8)
    Cmid_p = _round_up(Cmid, 8)
    Cout_p = _round_up(Cout, 8)

    f32 = jnp.float32
    # Flattened NCHW (no layout transpose of activations), zero padded on channels and lanes.
    x_flat = x_nchw.reshape(N, Cin, HW)
    x_pad = jnp.pad(x_flat, ((0, 0), (0, Cin_p - Cin), (0, L0 - HW)))

    def prep_w(w, co_p, ci_p):
        co, ci, kk, _ = w.shape
        w = jnp.pad(w.astype(f32), ((0, co_p - co), (0, ci_p - ci), (0, 0), (0, 0)))
        # (O, I, kh, kw) -> (O, kh, kw, I) -> (O, K*K*I); column order matches im2col taps.
        return jnp.transpose(w, (0, 2, 3, 1)).reshape(co_p, kk * kk * ci_p)

    w1_mat = prep_w(w1, Cmid_p, Cin_p)
    w2_mat = prep_w(w2, Cout_p, Cmid_p)
    b1_col = jnp.pad(b1.astype(f32), (0, Cmid_p - Cmid)).reshape(Cmid_p, 1)
    b2_col = jnp.pad(b2.astype(f32), (0, Cout_p - Cout)).reshape(Cout_p, 1)

    # Advisory cost estimate so XLA schedules the custom call sensibly.
    itemsize = jnp.dtype(x_nchw.dtype).itemsize
    flops = 2 * N * (Cmid_p * (k * k * Cin_p) * L1 + Cout_p * (k * k * Cmid_p) * L2)
    bytes_accessed = itemsize * (N * Cin_p * L0 + N * Cout_p * L2) + 4 * (
        w1_mat.size + w2_mat.size + b1_col.size + b2_col.size)
    cost = pl.CostEstimate(flops=flops, transcendentals=0, bytes_accessed=bytes_accessed)

    out_frames = pl.pallas_call(
        functools.partial(_unet_block_kernel, k=k, w_img=W, l1=L1, l2=L2),
        out_shape=jax.ShapeDtypeStruct((N, Cout_p, L2), x_nchw.dtype),
        grid_spec=pltpu.PrefetchScalarGridSpec(
            num_scalar_prefetch=0,
            grid=(N,),  # one image per step; >=2 parallel steps keeps both v7x TCs busy
            in_specs=[
                pl.BlockSpec((1, Cin_p, L0), lambda n: (n, 0, 0)),
                pl.BlockSpec((Cmid_p, k * k * Cin_p), lambda n: (0, 0)),   # constant index:
                pl.BlockSpec((Cmid_p, 1), lambda n: (0, 0)),               # weights/biases are
                pl.BlockSpec((Cout_p, k * k * Cmid_p), lambda n: (0, 0)),  # DMA'd once and
                pl.BlockSpec((Cout_p, 1), lambda n: (0, 0)),               # reused per step
            ],
            out_specs=pl.BlockSpec((1, Cout_p, L2), lambda n: (n, 0, 0)),
        ),
        compiler_params=pltpu.CompilerParams(
            dimension_semantics=("parallel",)),
        cost_estimate=cost,
    )(x_pad, w1_mat, b1_col, w2_mat, b2_col)

    # Valid-window extraction: lane i = oh*W + ow.
    out = out_frames[:, :Cout, :HW].reshape(N, Cout, H, W)[:, :, :Ho2, :Wo2]
    return out


def _reference(x_nchw, w1, b1, w2, b2):
    """Pure-JAX reference (matches PyTorch Conv2d valid conv semantics)."""
    dn = jax.lax.conv_dimension_numbers(x_nchw.shape, w1.shape, ("NCHW", "OIHW", "NCHW"))
    h = jax.lax.conv_general_dilated(x_nchw, w1, (1, 1), "VALID", dimension_numbers=dn)
    h = jnp.maximum(h + b1.reshape(1, -1, 1, 1), 0.0)
    dn2 = jax.lax.conv_dimension_numbers(h.shape, w2.shape, ("NCHW", "OIHW", "NCHW"))
    o = jax.lax.conv_general_dilated(h, w2, (1, 1), "VALID", dimension_numbers=dn2)
    return jnp.maximum(o + b2.reshape(1, -1, 1, 1), 0.0)


if __name__ == "__main__":
    # UNetConvBlock(in_size=4, out_size=8, kernel_size=3)
    N, Cin, H, W = 2, 4, 16, 16
    Cout = 8
    K = 3

    key = jax.random.PRNGKey(0)
    kx, kw1, kb1, kw2, kb2 = jax.random.split(key, 5)

    x = jax.random.normal(kx, (N, Cin, H, W), jnp.float32)
    # Deterministic synthetic parameters (PyTorch Conv2d shapes: OIHW weights, (O,) bias).
    w1 = jax.random.normal(kw1, (Cout, Cin, K, K), jnp.float32) * 0.1
    b1 = jax.random.normal(kb1, (Cout,), jnp.float32) * 0.1
    w2 = jax.random.normal(kw2, (Cout, Cout, K, K), jnp.float32) * 0.1
    b2 = jax.random.normal(kb2, (Cout,), jnp.float32) * 0.1

    # jit the whole wrapper so padding / weight repacking / final slice fuse around the kernel.
    block_fn = jax.jit(functools.partial(unet_conv_block, kernel_size=K))
    out = jax.block_until_ready(block_fn(x, w1, b1, w2, b2))

    ref = jax.block_until_ready(_reference(x, w1, b1, w2, b2))
    assert out.shape == (N, Cout, H - 2 * (K - 1), W - 2 * (K - 1)), out.shape
    assert jnp.allclose(out, ref, atol=1e-4, rtol=1e-4), float(jnp.max(jnp.abs(out - ref)))

    print("KERNEL_OK")
</pallas_src>

<mosaic_0001>
module attributes {stable_mosaic.version = 11 : i64} {
  func.func @_unet_block_kernel(%arg0: i32, %arg1: memref<1x8x512xf32, #tpu.memory_space<vmem>>, %arg2: memref<8x72xf32, #tpu.memory_space<vmem>>, %arg3: memref<8x1xf32, #tpu.memory_space<vmem>>, %arg4: memref<8x72xf32, #tpu.memory_space<vmem>>, %arg5: memref<8x1xf32, #tpu.memory_space<vmem>>, %arg6: memref<1x8x256xf32, #tpu.memory_space<vmem>>) attributes {dimension_semantics = [#tpu.dimension_semantics<parallel>], iteration_bounds = array<i64: 2>, scalar_prefetch = 0 : i64, scratch_operands = 0 : i64, tpu.core_type = #tpu.core_type<tc>, window_params = [{transform_indices = @transform_0, window_bounds = array<i64: 1, 8, 512>}, {pipeline_mode = #tpu.pipeline_mode<synchronous>, transform_indices = @transform_1, window_bounds = array<i64: 8, 72>}, {pipeline_mode = #tpu.pipeline_mode<synchronous>, transform_indices = @transform_2, window_bounds = array<i64: 8, 1>}, {pipeline_mode = #tpu.pipeline_mode<synchronous>, transform_indices = @transform_3, window_bounds = array<i64: 8, 72>}, {pipeline_mode = #tpu.pipeline_mode<synchronous>, transform_indices = @transform_4, window_bounds = array<i64: 8, 1>}, {transform_indices = @transform_5, window_bounds = array<i64: 1, 8, 256>}]} {
    %c0 = arith.constant 0 : index
    %c0_0 = arith.constant 0 : index
    %c0_1 = arith.constant 0 : index
    %0 = vector.load %arg1[%c0, %c0_0, %c0_1] : memref<1x8x512xf32, #tpu.memory_space<vmem>>, vector<1x8x512xf32>
    %1 = vector.shape_cast %0 : vector<1x8x512xf32> to vector<8x512xf32>
    %c0_2 = arith.constant 0 : index
    %c0_3 = arith.constant 0 : index
    %2 = vector.load %arg2[%c0_2, %c0_3] : memref<8x72xf32, #tpu.memory_space<vmem>>, vector<8x72xf32>
    %c0_4 = arith.constant 0 : index
    %c0_5 = arith.constant 0 : index
    %3 = vector.load %arg4[%c0_4, %c0_5] : memref<8x72xf32, #tpu.memory_space<vmem>>, vector<8x72xf32>
    %c0_6 = arith.constant 0 : index
    %c0_7 = arith.constant 0 : index
    %4 = vector.load %arg3[%c0_6, %c0_7] : memref<8x1xf32, #tpu.memory_space<vmem>>, vector<8x1xf32>
    %5 = vector.extract_strided_slice %1 {offsets = [0, 0], sizes = [8, 384], strides = [1, 1]} : vector<8x512xf32> to vector<8x384xf32>
    %6 = vector.extract_strided_slice %1 {offsets = [0, 1], sizes = [8, 384], strides = [1, 1]} : vector<8x512xf32> to vector<8x384xf32>
    %7 = vector.extract_strided_slice %1 {offsets = [0, 2], sizes = [8, 384], strides = [1, 1]} : vector<8x512xf32> to vector<8x384xf32>
    %8 = vector.extract_strided_slice %1 {offsets = [0, 16], sizes = [8, 384], strides = [1, 1]} : vector<8x512xf32> to vector<8x384xf32>
    %9 = vector.extract_strided_slice %1 {offsets = [0, 17], sizes = [8, 384], strides = [1, 1]} : vector<8x512xf32> to vector<8x384xf32>
    %10 = vector.extract_strided_slice %1 {offsets = [0, 18], sizes = [8, 384], strides = [1, 1]} : vector<8x512xf32> to vector<8x384xf32>
    %11 = vector.extract_strided_slice %1 {offsets = [0, 32], sizes = [8, 384], strides = [1, 1]} : vector<8x512xf32> to vector<8x384xf32>
    %12 = vector.extract_strided_slice %1 {offsets = [0, 33], sizes = [8, 384], strides = [1, 1]} : vector<8x512xf32> to vector<8x384xf32>
    %13 = vector.extract_strided_slice %1 {offsets = [0, 34], sizes = [8, 384], strides = [1, 1]} : vector<8x512xf32> to vector<8x384xf32>
    %14 = tpu.concatenate %5, %6, %7, %8, %9, %10, %11, %12, %13 in 0 : vector<8x384xf32>, vector<8x384xf32>, vector<8x384xf32>, vector<8x384xf32>, vector<8x384xf32>, vector<8x384xf32>, vector<8x384xf32>, vector<8x384xf32>, vector<8x384xf32> -> vector<72x384xf32>
    %cst = arith.constant dense<0.000000e+00> : vector<8x384xf32>
    %15 = tpu.matmul %2, %14, %cst {dimension_numbers = #tpu.dot_dimension_numbers<[1], [0], [0], [1], [0, 0, 1, 1], [], []>} : vector<8x72xf32>, vector<72x384xf32>, vector<8x384xf32> -> vector<8x384xf32>
    %16 = vector.broadcast %4 : vector<8x1xf32> to vector<8x384xf32>
    %17 = arith.addf %15, %16 : vector<8x384xf32>
    %cst_8 = arith.constant 0.000000e+00 : f32
    %18 = vector.broadcast %cst_8 : f32 to vector<8x384xf32>
    %19 = arith.maximumf %17, %18 : vector<8x384xf32>
    %c0_9 = arith.constant 0 : index
    %c0_10 = arith.constant 0 : index
    %20 = vector.load %arg5[%c0_9, %c0_10] : memref<8x1xf32, #tpu.memory_space<vmem>>, vector<8x1xf32>
    %21 = vector.extract_strided_slice %19 {offsets = [0, 0], sizes = [8, 256], strides = [1, 1]} : vector<8x384xf32> to vector<8x256xf32>
    %22 = vector.extract_strided_slice %19 {offsets = [0, 1], sizes = [8, 256], strides = [1, 1]} : vector<8x384xf32> to vector<8x256xf32>
    %23 = vector.extract_strided_slice %19 {offsets = [0, 2], sizes = [8, 256], strides = [1, 1]} : vector<8x384xf32> to vector<8x256xf32>
    %24 = vector.extract_strided_slice %19 {offsets = [0, 16], sizes = [8, 256], strides = [1, 1]} : vector<8x384xf32> to vector<8x256xf32>
    %25 = vector.extract_strided_slice %19 {offsets = [0, 17], sizes = [8, 256], strides = [1, 1]} : vector<8x384xf32> to vector<8x256xf32>
    %26 = vector.extract_strided_slice %19 {offsets = [0, 18], sizes = [8, 256], strides = [1, 1]} : vector<8x384xf32> to vector<8x256xf32>
    %27 = vector.extract_strided_slice %19 {offsets = [0, 32], sizes = [8, 256], strides = [1, 1]} : vector<8x384xf32> to vector<8x256xf32>
    %28 = vector.extract_strided_slice %19 {offsets = [0, 33], sizes = [8, 256], strides = [1, 1]} : vector<8x384xf32> to vector<8x256xf32>
    %29 = vector.extract_strided_slice %19 {offsets = [0, 34], sizes = [8, 256], strides = [1, 1]} : vector<8x384xf32> to vector<8x256xf32>
    %30 = tpu.concatenate %21, %22, %23, %24, %25, %26, %27, %28, %29 in 0 : vector<8x256xf32>, vector<8x256xf32>, vector<8x256xf32>, vector<8x256xf32>, vector<8x256xf32>, vector<8x256xf32>, vector<8x256xf32>, vector<8x256xf32>, vector<8x256xf32> -> vector<72x256xf32>
    %cst_11 = arith.constant dense<0.000000e+00> : vector<8x256xf32>
    %31 = tpu.matmul %3, %30, %cst_11 {dimension_numbers = #tpu.dot_dimension_numbers<[1], [0], [0], [1], [0, 0, 1, 1], [], []>} : vector<8x72xf32>, vector<72x256xf32>, vector<8x256xf32> -> vector<8x256xf32>
    %32 = vector.broadcast %20 : vector<8x1xf32> to vector<8x256xf32>
    %33 = arith.addf %31, %32 : vector<8x256xf32>
    %cst_12 = arith.constant 0.000000e+00 : f32
    %34 = vector.broadcast %cst_12 : f32 to vector<8x256xf32>
    %35 = arith.maximumf %33, %34 : vector<8x256xf32>
    %c0_13 = arith.constant 0 : index
    %c0_14 = arith.constant 0 : index
    %c0_15 = arith.constant 0 : index
    %36 = vector.load %arg6[%c0_13, %c0_14, %c0_15] : memref<1x8x256xf32, #tpu.memory_space<vmem>>, vector<1x8x256xf32>
    %37 = vector.shape_cast %36 : vector<1x8x256xf32> to vector<8x256xf32>
    %38 = vector.shape_cast %35 : vector<8x256xf32> to vector<1x8x256xf32>
    tpu.vector_store %arg6[%c0_13, %c0_14, %c0_15], %38 {strides = array<i32>} : memref<1x8x256xf32, #tpu.memory_space<vmem>>, vector<1x8x256xf32>,
    return
  }
  func.func @transform_0(%arg0: i32) -> (i32, i32, i32) {
    %c0_i32 = arith.constant 0 : i32
    %c0_i32_0 = arith.constant 0 : i32
    %c0_i32_1 = arith.constant 0 : i32
    return %arg0, %c0_i32, %c0_i32_0 : i32, i32, i32
  }
  func.func @transform_1(%arg0: i32) -> (i32, i32) {
    %c0_i32 = arith.constant 0 : i32
    %c0_i32_0 = arith.constant 0 : i32
    %c0_i32_1 = arith.constant 0 : i32
    return %c0_i32, %c0_i32_0 : i32, i32
  }
  func.func @transform_2(%arg0: i32) -> (i32, i32) {
    %c0_i32 = arith.constant 0 : i32
    %c0_i32_0 = arith.constant 0 : i32
    %c0_i32_1 = arith.constant 0 : i32
    return %c0_i32, %c0_i32_0 : i32, i32
  }
  func.func @transform_3(%arg0: i32) -> (i32, i32) {
    %c0_i32 = arith.constant 0 : i32
    %c0_i32_0 = arith.constant 0 : i32
    %c0_i32_1 = arith.constant 0 : i32
    return %c0_i32, %c0_i32_0 : i32, i32
  }
  func.func @transform_4(%arg0: i32) -> (i32, i32) {
    %c0_i32 = arith.constant 0 : i32
    %c0_i32_0 = arith.constant 0 : i32
    %c0_i32_1 = arith.constant 0 : i32
    return %c0_i32, %c0_i32_0 : i32, i32
  }
  func.func @transform_5(%arg0: i32) -> (i32, i32, i32) {
    %c0_i32 = arith.constant 0 : i32
    %c0_i32_0 = arith.constant 0 : i32
    %c0_i32_1 = arith.constant 0 : i32
    return %arg0, %c0_i32, %c0_i32_0 : i32, i32, i32
  }
}

</mosaic_0001>

<bundles_post_ra>
// kernel: unet_conv_block.1
= control target key start
LH: loop header
LB: loop body
LE: loop exit
PB: predicated region body
PF: predicated region fallthrough
CT: control target
= control target key end

     0   :  { %s999_s18 = smov 0   ;;  %s1128_s0 = inlined_call_operand.vmem [shape: f32[2,8,512], index: 0, kind: input, shape index: {}]   ;;  %s1129_s1 = inlined_call_operand.vmem [shape: f32[8,72], index: 1, kind: input, shape index: {}]   ;;  %s1130_s2 = inlined_call_operand.vmem [shape: f32[8,1], index: 2, kind: input, shape index: {}]   ;;  %s1131_s3 = inlined_call_operand.vmem [shape: f32[8,72], index: 3, kind: input, shape index: {}]   ;;  %s1132_s4 = inlined_call_operand.vmem [shape: f32[8,1], index: 4, kind: input, shape index: {}]   ;;  %s1133_s5 = inlined_call_operand.vmem [shape: f32[2,8,256], index: 5, kind: output, shape index: {}]  }
   0x1 LB: > { %s731_s19 = sadd.s32 4294967295, %s955_s18   ;;  %p735_p0 = scmp.ge.s32.totalorder %s955_s18, 1  ;;  %s955_s18 = sphi %s999_s18, %s15_s18  }
   0x2   : > { %p187_p1 = scmp.lt.s32.totalorder %s955_s18, 3 }
   0x4   : > { %p188_p2 = pnand %p735_p0, %p187_p1 }
   0x5   : > { %p215_p3 = scmp.lt.s32.totalorder (!%p188_p2), %s731_s19, 1  ;;  %v957_v0 = vmov (!%p188_p2), 0.0|0.0   ;;  %s958_s24 = smov (!%p188_p2), 126   ;;  %v963_v7 = vmov (!%p188_p2), 0.0   ;;  %vm966_vm0 = vmmov (!%p188_p2), 0   ;;  %v967_v8 = vmov (!%p188_p2), 0  }
   0x6   : > { %191 = sbr.rel (%p188_p2) target bundleno = 753 (0x2f1), region = 40  ;;  %794 = vmatprep.subr.bf16.mxu1 (!%p188_p2), %v957_v0  ;;  %s959_s25 = smov (!%p188_p2), 127   ;;  %429 = vmatprep.mubr.f32.mxu0 (!%p188_p2), %v963_v7  ;;  %v231_v9 = vld [vmem:[%s1130_s2] sm:$0xff] (!%p188_p2)  ;;  %vm244_vm1 = vcmask (!%p188_p2), 1039360   ;;  %vm259_vm2 = vcmask (!%p188_p2), 1031168   ;;  %vm274_vm3 = vcmask (!%p188_p2), 916480  }
   0x7   : > { %s960_s26 = smov (!%p188_p2), 112   ;;  %s961_s27 = smov (!%p188_p2), 110   ;;  %775 = vmatprep.mubr.msk.f32.mxu1 (!%p188_p2), %vm966_vm0, %v963_v7  ;;  %912 = vset.pattern.permute.xlu0 (!%p188_p2), %v967_v8  ;;  %vm289_vm4 = vcmask (!%p188_p2), 908288   ;;  %vm304_vm5 = vcmask (!%p188_p2), 900096   ;;  %vm319_vm6 = vcmask (!%p188_p2), 785408   ;;  %vm334_vm7 = vcmask (!%p188_p2), 777216  }
   0x8   : > { %s962_s28 = smov (!%p188_p2), 111   ;;  %s964_s29 = smov (!%p188_p2), 95   ;;  %948 = vset.pattern.permute.xlu1 (!%p188_p2), %v967_v8  ;;  %vm349_vm8 = vcmask (!%p188_p2), 769024   ;;  %vm361_vm9 = vcmask (!%p188_p2), 588800  }
   0x9   : > { %s965_s30 = smov (!%p188_p2), 96   ;;  %s968_s6 = smov (!%p188_p2), 94  }
   0xd   : > { %s1135_s19 = smov (!%p215_p3, %s731_s19), 1 }
   0xe   : > { %s745_s20 = sshll.u32 %s1135_s19, 5  ;;  %s746_s15 = sshll.u32 %s1135_s19, 4 }
   0xf   : > { %s219_s23 = scalar_lea.vmem %s1128_s0, %s745_s20  ;;  %s224_s20 = scalar_lea.vmem %s1133_s5, %s746_s15 }
  0x10   : > { %v226_v1 = vld [vmem:[%s219_s23 + $0x8] sm:$0xff]  ;;  %v1014_v2 = vld [vmem:[%s219_s23 + $0x10] sm:$0xff]  ;;  %v1016_v3 = vld [vmem:[%s219_s23] sm:$0xff] }
  0x11   : > { %v852_v4 = vpack.i.bf16 %v1014_v2, %v226_v1  ;;  %v228_v5 = vld [vmem:[%s219_s23 + $0x18] sm:$0xff] }
  0x12   : > { %v847_v6 = vpack.i.bf16 %v228_v5, %v1016_v3 }
  0x13   : > { %853 = vrot.lane.b32.xlu1 %v852_v4, %s958_s24  ;;  %843 = vrot.lane.b32.xlu0 %v852_v4, %s959_s25 }
  0x17   : > { %858 = vrot.lane.b32.xlu1 %v852_v4, %s960_s26  ;;  %848 = vrot.lane.b32.xlu0 %v847_v6, %s959_s25 }
  0x1b   : > { %868 = vrot.lane.b32.xlu1 %v847_v6, %s960_s26  ;;  %863 = vrot.lane.b32.xlu0 %v847_v6, %s958_s24 }
  0x1f   : > { %878 = vrot.lane.b32.xlu1 %v852_v4, %s961_s27  ;;  %873 = vrot.lane.b32.xlu0 %v852_v4, %s962_s28 }
  0x23   : > { %888 = vrot.lane.b32.xlu1 %v847_v6, %s961_s27  ;;  %883 = vrot.lane.b32.xlu0 %v847_v6, %s962_s28 }
  0x27   : > { %898 = vrot.lane.b32.xlu1 %v852_v4, %s964_s29  ;;  %893 = vrot.lane.b32.xlu0 %v852_v4, %s965_s30 }
  0x2b   : > { %908 = vrot.lane.b32.xlu1 %v847_v6, %s964_s29  ;;  %903 = vrot.lane.b32.xlu0 %v847_v6, %s965_s30 }
  0x2f   : > { %345 = vrot.lane.b32.xlu1 %v1014_v2, %s968_s6  ;;  %343 = vrot.lane.b32.xlu0 %v226_v1, %s968_s6 }
  0x33   : > { %347 = vrot.lane.b32.xlu1 %v228_v5, %s968_s6  ;;  %341 = vrot.lane.b32.xlu0 %v1016_v3, %s968_s6 }
  0x37   : > { %358 = vperm.xlu0 %912, %v231_v9  }
  0x85   : > { %v854_v10 = vpop.permute.xlu1 %853  ;;  %v844_v11 = vpop.permute.xlu0 %843 }
  0x86   : > { %v846_v12 = vunpack.i.h.bf16 %v844_v11  ;;  %v845_v13 = vunpack.i.l.bf16 %v844_v11  ;;  %v856_v14 = vunpack.i.h.bf16 %v854_v10  ;;  %v855_v15 = vunpack.i.l.bf16 %v854_v10 }
  0x88   : > { %v246_v16 = vsel %vm244_vm1, %v845_v13, %v846_v12  ;;  %v261_v26 = vsel %vm259_vm2, %v855_v15, %v856_v14 }
  0x89   : > { %v859_v17 = vpop.permute.xlu1 %858  ;;  %v849_v18 = vpop.permute.xlu0 %848  ;;  %v778_v19 = vpack.c.bf16 %v246_v16, %v226_v1 }
  0x8a   : > { %v861_v20 = vunpack.i.h.bf16 %v859_v17  ;;  %v860_v21 = vunpack.i.l.bf16 %v859_v17  ;;  %v851_v22 = vunpack.i.h.bf16 %v849_v18  ;;  %v850_v23 = vunpack.i.l.bf16 %v849_v18 }
  0x8b   : > { %779 = vmatprep.subr.bf16.mxu0 %v778_v19 }
  0x8c   : > { %v245_v24 = vsel %vm244_vm1, %v850_v23, %v845_v13  ;;  %v247_v25 = vsel %vm244_vm1, %v846_v12, %v851_v22  ;;  %v276_v27 = vsel %vm274_vm3, %v860_v21, %v861_v20 }
  0x8d   : > { %v869_v28 = vpop.permute.xlu1 %868  ;;  %v864_v29 = vpop.permute.xlu0 %863  ;;  %v780_v30 = vpack.c.bf16 %v245_v24, %v1016_v3  ;;  %v795_v31 = vpack.c.bf16 %v247_v25, %v1014_v2  ;;  %v782_v32 = vpack.c.bf16 %v276_v27, %v261_v26  ;;  %v229_v27 = vld [vmem:[%s1129_s1] sm:$0xff] }
  0x8e   : > { %v871_v33 = vunpack.i.h.bf16 %v869_v28  ;;  %v870_v34 = vunpack.i.l.bf16 %v869_v28  ;;  %v866_v35 = vunpack.i.h.bf16 %v864_v29  ;;  %v865_v36 = vunpack.i.l.bf16 %v864_v29 }
  0x8f   : > { %781 = vmatpush1.bf16.msra.mxu0 %v780_v30  ;;  %796 = vmatpush3.bf16.msra.mxu1 %v795_v31 }
  0x90   : > { %783 = vmatprep.subr.bf16.mxu0 %v782_v32  ;;  %797 = vmatprep.subr.bf16.mxu1 %v957_v0  ;;  %v260_v37 = vsel %vm259_vm2, %v865_v36, %v855_v15  ;;  %v275_v38 = vsel %vm274_vm3, %v870_v34, %v860_v21  ;;  %v262_v39 = vsel %vm259_vm2, %v856_v14, %v866_v35 }
  0x91   : > { %v879_v40 = vpop.permute.xlu1 %878  ;;  %v874_v41 = vpop.permute.xlu0 %873  ;;  %v784_v42 = vpack.c.bf16 %v275_v38, %v260_v37  ;;  %v277_v43 = vsel %vm274_vm3, %v861_v20, %v871_v33 }
  0x92   : > { %v881_v44 = vunpack.i.h.bf16 %v879_v40  ;;  %v880_v45 = vunpack.i.l.bf16 %v879_v40  ;;  %v876_v46 = vunpack.i.h.bf16 %v874_v41  ;;  %v875_v47 = vunpack.i.l.bf16 %v874_v41  ;;  %v509_v41 = vld [vmem:[%s1132_s4] sm:$0xff] }
  0x93   : > { %785 = vmatpush1.bf16.msra.mxu0 %v784_v42  ;;  %v798_v48 = vpack.c.bf16 %v277_v43, %v262_v39 }
  0x94   : > { %v291_v49 = vsel %vm289_vm4, %v875_v47, %v876_v46  ;;  %v306_v50 = vsel %vm304_vm5, %v880_v45, %v881_v44 }
  0x95   : > { %799 = vmatpush3.bf16.msra.mxu1 %v798_v48  ;;  %v889_v51 = vpop.permute.xlu1 %888  ;;  %v884_v52 = vpop.permute.xlu0 %883  ;;  %v786_v53 = vpack.c.bf16 %v306_v50, %v291_v49 }
  0x96   : > { %v891_v54 = vunpack.i.h.bf16 %v889_v51  ;;  %v890_v55 = vunpack.i.l.bf16 %v889_v51  ;;  %v886_v56 = vunpack.i.h.bf16 %v884_v52  ;;  %v885_v57 = vunpack.i.l.bf16 %v884_v52  ;;  %800 = vmatprep.subr.bf16.mxu1 %v957_v0 }
  0x97   : > { %787 = vmatprep.subr.bf16.mxu0 %v786_v53 }
  0x98   : > { %v290_v58 = vsel %vm289_vm4, %v885_v57, %v875_v47  ;;  %v305_v59 = vsel %vm304_vm5, %v890_v55, %v880_v45  ;;  %v292_v60 = vsel %vm289_vm4, %v876_v46, %v886_v56  ;;  %v307_v61 = vsel %vm304_vm5, %v881_v44, %v891_v54 }
  0x99   : > { %v899_v62 = vpop.permute.xlu1 %898  ;;  %v894_v63 = vpop.permute.xlu0 %893  ;;  %v788_v1 = vpack.c.bf16 %v305_v59, %v290_v58  ;;  %v801_v2 = vpack.c.bf16 %v307_v61, %v292_v60 }
  0x9a   : > { %v901_v3 = vunpack.i.h.bf16 %v899_v62  ;;  %v900_v4 = vunpack.i.l.bf16 %v899_v62  ;;  %v896_v5 = vunpack.i.h.bf16 %v894_v63  ;;  %v895_v6 = vunpack.i.l.bf16 %v894_v63 }
  0x9b   : > { %789 = vmatpush1.bf16.msra.mxu0 %v788_v1  ;;  %802 = vmatpush3.bf16.msra.mxu1 %v801_v2 }
  0x9c   : > { %v321_v8 = vsel %vm319_vm6, %v895_v6, %v896_v5  ;;  %v336_v9 = vsel %vm334_vm7, %v900_v4, %v901_v3  ;;  %803 = vmatprep.subr.bf16.mxu1 %v957_v0 }
  0x9d   : > { %v909_v10 = vpop.permute.xlu1 %908  ;;  %v904_v11 = vpop.permute.xlu0 %903  ;;  %v790_v12 = vpack.c.bf16 %v336_v9, %v321_v8 }
  0x9e   : > { %v911_v13 = vunpack.i.h.bf16 %v909_v10  ;;  %v910_v14 = vunpack.i.l.bf16 %v909_v10  ;;  %v906_v15 = vunpack.i.h.bf16 %v904_v11  ;;  %v905_v16 = vunpack.i.l.bf16 %v904_v11 }
  0x9f   : > { %791 = vmatprep.subr.bf16.mxu0 %v790_v12 }
  0xa0   : > { %v320_v17 = vsel %vm319_vm6, %v905_v16, %v895_v6  ;;  %v335_v18 = vsel %vm334_vm7, %v910_v14, %v900_v4  ;;  %v322_v19 = vsel %vm319_vm6, %v896_v5, %v906_v15  ;;  %v337_v20 = vsel %vm334_vm7, %v901_v3, %v911_v13 }
  0xa1   : > { %v346_v21 = vpop.permute.xlu1 %345  ;;  %v344_v22 = vpop.permute.xlu0 %343  ;;  %v792_v0 = vpack.c.bf16 %v335_v18, %v320_v17  ;;  %v804_v23 = vpack.c.bf16 %v337_v20, %v322_v19 }
  0xa2   : > { %v351_v24 = vsel %vm349_vm8, %v344_v22, %v346_v21 }
  0xa3   : > { %793 = vmatpush1.bf16.msra.mxu0 %v792_v0  ;;  %805 = vmatpush3.bf16.msra.mxu1 %v804_v23 }
  0xa4   : > { %381 = vmatprep.subr.mxu0 %v351_v24  ;;  %773 = vmatprep.subr.mxu1 %v963_v7 }
  0xa5   : > { %v348_v25 = vpop.permute.xlu1 %347  ;;  %v342_v26 = vpop.permute.xlu0 %341 }
  0xa6   : > { %v350_v28 = vsel %vm349_vm8, %v342_v26, %v344_v22  ;;  %v352_v29 = vsel %vm349_vm8, %v346_v21, %v348_v25 }
  0xa7   : > { %382 = vmatpush1.msra.mxu0 %v350_v28  ;;  %774 = vmatpush3.msra.mxu1 %v352_v29 }
  0xa8   : > { %740 = vmatmul.mubr.msk.f32.vlgmr.msra.gmra.mrb[0].mxu0 %vm361_vm9, %v229_v27  ;;  %776 = vmatmul.mubr.msk.f32.vlgmr.msra.gmra.mrb[0].mxu1 %vm361_vm9, %v229_v27 }
  0xa9   : > { %665 = vmatprep.mubr.f32.mxu0 %v963_v7 }
  0xb6   : > { %v359_v30 = vpop.permute.xlu0 %358 }
 0x17b   : > { %v431_v31 = vpop.f32.mrb[0].mxu0  ;;  %v502_v32 = vpop.f32.mrb[0].mxu1 }
 0x17c   : > { %v432_v33 = vadd.f32 %v431_v31, %v359_v30  ;;  %v433_v34 = vpop.f32.mrb[1].mxu0  ;;  %v777_v35 = vpop.f32.mrb[1].mxu1  ;;  %v503_v37 = vadd.f32 %v502_v32, %v359_v30 }
 0x17d   : > { %v434_v38 = vadd.f32 %v433_v34, %v359_v30 }
 0x17e   : > { %v506_v36 = vmax.f32 %v432_v33, 0.0  ;;  %v508_v39 = vmax.f32 %v503_v37, 0.0  ;;  %v230_v33 = vld [vmem:[%s1131_s3] sm:$0xff] }
 0x17f   : > { %v507_v40 = vmax.f32 %v434_v38, 0.0 }
 0x180   : > { %523 = vrot.lane.b32.xlu0 %v506_v36, %s958_s24  ;;  %513 = vrot.lane.b32.xlu1 %v506_v36, %s959_s25 }
 0x181   : > { %v918_v7 = vpack.i.bf16 %v508_v39, %v507_v40 }
 0x184   : > { %543 = vrot.lane.b32.xlu0 %v506_v36, %s962_s28  ;;  %533 = vrot.lane.b32.xlu1 %v506_v36, %s960_s26 }
 0x188   : > { %563 = vrot.lane.b32.xlu0 %v506_v36, %s965_s30  ;;  %553 = vrot.lane.b32.xlu1 %v506_v36, %s961_s27 }
 0x18c   : > { %919 = vrot.lane.b32.xlu0 %v918_v7, %s958_s24  ;;  %914 = vrot.lane.b32.xlu1 %v918_v7, %s959_s25 }
 0x190   : > { %929 = vrot.lane.b32.xlu0 %v918_v7, %s962_s28  ;;  %924 = vrot.lane.b32.xlu1 %v918_v7, %s960_s26 }
 0x194   : > { %939 = vrot.lane.b32.xlu0 %v918_v7, %s965_s30  ;;  %934 = vrot.lane.b32.xlu1 %v918_v7, %s961_s27 }
 0x198   : > { %585 = vrot.lane.b32.xlu0 %v507_v40, %s968_s6  ;;  %944 = vrot.lane.b32.xlu1 %v918_v7, %s964_s29 }
 0x19c   : > { %583 = vrot.lane.b32.xlu0 %v506_v36, %s968_s6  ;;  %573 = vrot.lane.b32.xlu1 %v506_v36, %s964_s29 }
 0x1a0   : > { %587 = vrot.lane.b32.xlu1 %v508_v39, %s968_s6 }
 0x1a4   : > { %595 = vperm.xlu1 %948, %v509_v41  }
 0x1f2   : > { %v524_v42 = vpop.permute.xlu0 %523  ;;  %v514_v43 = vpop.permute.xlu1 %513 }
 0x1f6   : > { %v544_v44 = vpop.permute.xlu0 %543  ;;  %v534_v45 = vpop.permute.xlu1 %533 }
 0x1fa   : > { %v564_v46 = vpop.permute.xlu0 %563  ;;  %v554_v47 = vpop.permute.xlu1 %553 }
 0x1fe   : > { %v920_v48 = vpop.permute.xlu0 %919  ;;  %v915_v49 = vpop.permute.xlu1 %914 }
 0x1ff   : > { %v917_v50 = vunpack.i.h.bf16 %v915_v49  ;;  %v916_v51 = vunpack.i.l.bf16 %v915_v49  ;;  %v922_v52 = vunpack.i.h.bf16 %v920_v48  ;;  %v921_v53 = vunpack.i.l.bf16 %v920_v48 }
 0x201   : > { %v519_v54 = vsel %vm244_vm1, %v514_v43, %v916_v51  ;;  %v520_v55 = vsel %vm244_vm1, %v916_v51, %v917_v50  ;;  %v529_v1 = vsel %vm259_vm2, %v524_v42, %v921_v53  ;;  %v530_v3 = vsel %vm259_vm2, %v921_v53, %v922_v52 }
 0x202   : > { %v808_v56 = vpack.c.bf16 %v519_v54, %v506_v36  ;;  %v930_v57 = vpop.permute.xlu0 %929  ;;  %v925_v58 = vpop.permute.xlu1 %924  ;;  %v806_v59 = vpack.c.bf16 %v520_v55, %v507_v40 }
 0x203   : > { %v927_v60 = vunpack.i.h.bf16 %v925_v58  ;;  %v926_v61 = vunpack.i.l.bf16 %v925_v58  ;;  %v932_v62 = vunpack.i.h.bf16 %v930_v57  ;;  %v931_v63 = vunpack.i.l.bf16 %v930_v57 }
 0x204   : > { %807 = vmatprep.subr.bf16.mxu0 %v806_v59 }
 0x205   : > { %v539_v2 = vsel %vm274_vm3, %v534_v45, %v926_v61  ;;  %809 = vmatpush1.bf16.msra.mxu0 %v808_v56  ;;  %v540_v4 = vsel %vm274_vm3, %v926_v61, %v927_v60  ;;  %v549_v12 = vsel %vm289_vm4, %v544_v44, %v931_v63  ;;  %v550_v13 = vsel %vm289_vm4, %v931_v63, %v932_v62 }
 0x206   : > { %v812_v5 = vpack.c.bf16 %v539_v2, %v529_v1  ;;  %v940_v6 = vpop.permute.xlu0 %939  ;;  %v935_v8 = vpop.permute.xlu1 %934  ;;  %v810_v9 = vpack.c.bf16 %v540_v4, %v530_v3 }
 0x207   : > { %v937_v10 = vunpack.i.h.bf16 %v935_v8  ;;  %v936_v11 = vunpack.i.l.bf16 %v935_v8  ;;  %v942_v14 = vunpack.i.h.bf16 %v940_v6  ;;  %v941_v15 = vunpack.i.l.bf16 %v940_v6 }
 0x208   : > { %811 = vmatprep.subr.bf16.mxu0 %v810_v9 }
 0x209   : > { %v559_v16 = vsel %vm304_vm5, %v554_v47, %v936_v11  ;;  %813 = vmatpush1.bf16.msra.mxu0 %v812_v5  ;;  %v560_v17 = vsel %vm304_vm5, %v936_v11, %v937_v10  ;;  %v570_v23 = vsel %vm319_vm6, %v941_v15, %v942_v14  ;;  %v569_v27 = vsel %vm319_vm6, %v564_v46, %v941_v15 }
 0x20a   : > { %v816_v18 = vpack.c.bf16 %v559_v16, %v549_v12  ;;  %v945_v19 = vpop.permute.xlu1 %944  ;;  %v814_v20 = vpack.c.bf16 %v560_v17, %v550_v13  ;;  %v586_v0 = vpop.permute.xlu0 %585 }
 0x20b   : > { %v947_v21 = vunpack.i.h.bf16 %v945_v19  ;;  %v946_v22 = vunpack.i.l.bf16 %v945_v19 }
 0x20c   : > { %815 = vmatprep.subr.bf16.mxu0 %v814_v20 }
 0x20d   : > { %817 = vmatpush1.bf16.msra.mxu0 %v816_v18  ;;  %v580_v24 = vsel %vm334_vm7, %v946_v22, %v947_v21 }
 0x20e   : > { %v574_v25 = vpop.permute.xlu1 %573  ;;  %v818_v26 = vpack.c.bf16 %v580_v24, %v570_v23  ;;  %v584_v30 = vpop.permute.xlu0 %583 }
 0x20f   : > { %v579_v28 = vsel %vm334_vm7, %v574_v25, %v946_v22  ;;  %v589_v34 = vsel %vm349_vm8, %v584_v30, %v586_v0 }
 0x210   : > { %v820_v29 = vpack.c.bf16 %v579_v28, %v569_v27  ;;  %819 = vmatprep.subr.bf16.mxu0 %v818_v26 }
 0x212   : > { %v588_v31 = vpop.permute.xlu1 %587  ;;  %821 = vmatpush1.bf16.msra.mxu0 %v820_v29 }
 0x213   : > { %v590_v32 = vsel %vm349_vm8, %v586_v0, %v588_v31 }
 0x214   : > { %617 = vmatprep.subr.mxu0 %v590_v32 }
 0x216   : > { %618 = vmatpush1.msra.mxu0 %v589_v34 }
 0x217   : > { %742 = vmatmul.mubr.msk.f32.vlgmr.msra.gmra.mrb[2].mxu0 %vm361_vm9, %v230_v33 }
 0x223   : > { %v596_v35 = vpop.permute.xlu1 %595 }
 0x2ea   : > { %v667_v36 = vpop.f32.mrb[2].mxu0 }
 0x2eb   : > { %v668_v37 = vadd.f32 %v667_v36, %v596_v35  ;;  %v669_v38 = vpop.f32.mrb[3].mxu0 }
 0x2ec   : > { %v670_v39 = vadd.f32 %v669_v38, %v596_v35 }
 0x2ed   : > { %v672_v40 = vmax.f32 %v668_v37, 0.0 }
 0x2ee   : > { %v673_v7 = vmax.f32 %v670_v39, 0.0 }
 0x2ef   : > { %674 = vst [vmem:[%s224_s20] sm:$0xff] %v672_v40 }
 0x2f0   : > { %675 = vst [vmem:[%s224_s20 + $0x8] sm:$0xff] %v673_v7 }
 0x2f1 PF: > { %s15_s18 = sadd.s32 1, %s955_s18  }
 0x2f2   : > { %p12_p4 = scmp.ge.s32.totalorder %s15_s18, 4  }
 0x2f4   :  { %14 = sbr.rel (!%p12_p4) target bundleno = 1 (0x1), region = 70 }

</bundles_post_ra>
